<compile_context>
chip_gen: v7x
topology: tpu7x:2x2x1
jax: 0.10.0
libtpu: 0.0.40
codegen_flags: <defaults>
</compile_context>

<pallas_src>
import functools

import jax
import jax.numpy as jnp
import numpy as np
from jax.experimental import pallas as pl
from jax.experimental.pallas import tpu as pltpu


# ---------------------------------------------------------------------------
# pltpu.roll rotation-convention guard (resolved once, eagerly, and cached).
# "Forward" == np.roll convention: elements move toward higher indices.
# ---------------------------------------------------------------------------
@functools.lru_cache(maxsize=None)
def _roll_is_forward() -> bool:
    def probe(x_ref, o_ref):
        o_ref[...] = pltpu.roll(x_ref[...], shift=1, axis=1)

    x = jnp.tile(jnp.arange(128, dtype=jnp.float32)[None, :], (8, 1))
    y = pl.pallas_call(
        probe, out_shape=jax.ShapeDtypeStruct((8, 128), jnp.float32))(x)
    return bool(y[0, 1] == 0.0)          # np.roll([0..127], 1)[1] == 0


# ---------------------------------------------------------------------------
# pl.Buffered(1) support probe (single-buffered constant-index inputs).
# Falls back to default (double-buffered) BlockSpecs if unsupported.
# ---------------------------------------------------------------------------
@functools.lru_cache(maxsize=None)
def _supports_single_buffer() -> bool:
    def probe(x_ref, o_ref):
        o_ref[...] = x_ref[...] + 1.0

    try:
        x = jnp.zeros((8, 128), jnp.float32)
        y = pl.pallas_call(
            probe,
            out_shape=jax.ShapeDtypeStruct((8, 128), jnp.float32),
            grid=(2,),
            in_specs=[pl.BlockSpec((8, 128), lambda i: (0, 0),
                                   pipeline_mode=pl.Buffered(1))],
            out_specs=pl.BlockSpec((8, 128), lambda i: (0, 0)),
        )(x)
        jax.block_until_ready(y)
        return True
    except Exception:
        return False


def _const_spec(shape, index_map):
    """BlockSpec for an input whose block never changes across the grid."""
    if _supports_single_buffer():
        return pl.BlockSpec(shape, index_map, pipeline_mode=pl.Buffered(1))
    return pl.BlockSpec(shape, index_map)


# ---------------------------------------------------------------------------
# Pallas kernel: whole Refinement forward for Bt packed batch elements per
# grid step, working on (channels, Bt*T) slabs.
# ---------------------------------------------------------------------------
def _refinement_kernel(x_ref, m_ref, w1_ref, wd_ref, bd_ref, wc_ref, bc_ref,
                       wo_ref, bo_ref, o_ref, *, num_layers, seg_len,
                       shift_index, roll_forward):
    F = wd_ref.shape[2]
    N = x_ref.shape[1]

    # Input 1x1 conv (bias folded: x carries a ones row, W1 a bias column).
    # bf16 operands, f32 accumulation on the MXU.
    h = jnp.dot(w1_ref[...], x_ref[...], preferred_element_type=jnp.float32)

    # Per-segment causal masks, hoisted once: {0,1} f32 (1, N) rows that zero
    # the first `s` frames of every packed segment, so rolls never leak data
    # across batch boundaries.  Applied as a sublane-broadcast multiply.
    masks = {s: m_ref[i] for s, i in dict(shift_index).items()}

    def shift_right(a, s):
        # Causal shift within each segment: out[:, t] = a[:, t - s] for local
        # frame index t >= s, else 0.
        if s == 0:
            return a
        if s >= seg_len:
            return jnp.zeros_like(a)
        amt = s if roll_forward else (N - s)
        return pltpu.roll(a, shift=amt, axis=1) * masks[s]

    for l in range(num_layers):                         # static, unrolled
        d = 2 ** l
        h_bf = h.astype(jnp.bfloat16)
        # Fused dilated causal conv (kernel size 3, taps t-2d, t-d, t): one
        # (3F, F) @ (F, N) matmul, then shift the *output* slabs (shifting
        # commutes with the channel contraction since the pad is zero).
        p = jnp.dot(wd_ref[l], h_bf, preferred_element_type=jnp.float32)
        acc = (shift_right(p[0 * F:1 * F], 2 * d)
               + shift_right(p[1 * F:2 * F], d)
               + p[2 * F:3 * F]
               + bd_ref[l])
        y = jnp.maximum(acc, 0.0)                       # ReLU
        # 1x1 conv + (identity) dropout + residual.
        z = jnp.dot(wc_ref[l], y.astype(jnp.bfloat16),
                    preferred_element_type=jnp.float32) + bc_ref[l]
        h = h + z

    # Four output heads fused as one stacked 1x1 conv == torch.cat on channels.
    o_ref[...] = jnp.dot(wo_ref[...], h.astype(jnp.bfloat16),
                         preferred_element_type=jnp.float32) + bo_ref[...]


def refinement_pallas(x, params, *, num_layers, batch_tile=None):
    """x: (B, D, T) float32 (NCT).  Returns (B, C_total, T) float32."""
    W1, b1, Wd, bd, Wc, bc, Wo, bo = params
    B, D, T = x.shape
    F = W1.shape[0]
    C = Wo.shape[0]

    # ---- lane packing: how many batch elements per grid step ----------------
    if batch_tile is None:
        # >=512 lanes per matmul amortizes per-step / per-push overheads; cap
        # by a VMEM budget (~12 live (F, lanes) f32 slabs + IO blocks must fit
        # well under v7x's 64 MiB physical VMEM).
        act_bytes_per_lane = (12 * F + 2 * (D + 1) + 2 * C) * 4
        max_lanes = max(T, (40 << 20) // act_bytes_per_lane)
        target_lanes = min(max(512, T), max_lanes)
        batch_tile = max(1, min(B, target_lanes // T))
        if batch_tile >= B > 1:        # keep >=2 parallel steps (v7x megacore)
            batch_tile = max(1, B // 2)
    Bt = batch_tile
    G = -(-B // Bt)                    # number of grid steps
    Bp = G * Bt
    Nt = Bt * T

    if Bp != B:                        # pad batch so it packs evenly
        x = jnp.concatenate(
            [x, jnp.zeros((Bp - B,) + x.shape[1:], x.dtype)], axis=0)

    # ---- wrapper-side operand prep -------------------------------------------
    # Fold b1: append a ones row to x and a bias column to W1 (free in XLA).
    x_aug = jnp.concatenate([x, jnp.ones((Bp, 1, T), x.dtype)], axis=1)
    x_pack = (x_aug.reshape(G, Bt, D + 1, T)
              .transpose(0, 2, 1, 3)
              .reshape(G, D + 1, Nt)
              .astype(jnp.bfloat16))
    W1_aug = jnp.concatenate([W1, b1], axis=1).astype(jnp.bfloat16)   # (F, D+1)

    # Fuse the 3 taps of each layer: (3L, F, F) tap-major -> (L, 3F, F); rows
    # [k*F:(k+1)*F] of layer l hold tap k (time shifts 2d, d, 0).
    Wd_st = Wd.reshape(num_layers, 3 * F, F).astype(jnp.bfloat16)
    Wc_b = Wc.astype(jnp.bfloat16)
    Wo_b = Wo.astype(jnp.bfloat16)

    # Per-segment causal masks for every distinct shift used by the layers.
    all_shifts = sorted({2 ** l for l in range(num_layers)}
                        | {2 ** (l + 1) for l in range(num_layers)})
    shifts = [s for s in all_shifts if s < T]
    t_loc = jnp.tile(jnp.arange(T, dtype=jnp.int32), Bt)[None, :]     # (1, Nt)
    if shifts:
        mask_arr = jnp.stack([(t_loc >= s) for s in shifts],
                             axis=0).astype(jnp.float32)              # (S,1,Nt)
    else:
        mask_arr = jnp.ones((1, 1, Nt), jnp.float32)
    shift_index = tuple((s, i) for i, s in enumerate(shifts))
    S = mask_arr.shape[0]

    # ---- explicit VMEM budget (scoped defaults are only 16/32 MiB) ----------
    f32b, bf16b = 4, 2
    weight_bytes = (F * (D + 1) * bf16b + num_layers * 3 * F * F * bf16b
                    + num_layers * F * f32b + num_layers * F * F * bf16b
                    + num_layers * F * f32b + C * F * bf16b + C * f32b
                    + S * Nt * f32b)
    io_bytes = 2 * (D + 1) * Nt * bf16b + 2 * C * Nt * f32b   # double-buffered
    act_bytes = 12 * F * Nt * f32b                            # live activations
    est = weight_bytes + io_bytes + act_bytes
    vmem_limit = int(min(max(2 * est, 32 << 20), 56 << 20))   # <= v7x physical

    kernel = functools.partial(
        _refinement_kernel, num_layers=num_layers, seg_len=T,
        shift_index=shift_index, roll_forward=_roll_is_forward())

    out_pack = pl.pallas_call(
        kernel,
        out_shape=jax.ShapeDtypeStruct((G, C, Nt), jnp.float32),
        grid_spec=pltpu.PrefetchScalarGridSpec(
            num_scalar_prefetch=0,
            grid=(G,),
            in_specs=[
                pl.BlockSpec((None, D + 1, Nt), lambda g: (g, 0, 0)),      # x
                _const_spec((S, 1, Nt), lambda g: (0, 0, 0)),              # masks
                _const_spec((F, D + 1), lambda g: (0, 0)),                 # W1|b1
                _const_spec((num_layers, 3 * F, F), lambda g: (0, 0, 0)),  # Wd
                _const_spec((num_layers, F, 1), lambda g: (0, 0, 0)),      # bd
                _const_spec((num_layers, F, F), lambda g: (0, 0, 0)),      # Wc
                _const_spec((num_layers, F, 1), lambda g: (0, 0, 0)),      # bc
                _const_spec((C, F), lambda g: (0, 0)),                     # Wo
                _const_spec((C, 1), lambda g: (0, 0)),                     # bo
            ],
            out_specs=pl.BlockSpec((None, C, Nt), lambda g: (g, 0, 0)),
        ),
        compiler_params=pltpu.CompilerParams(
            dimension_semantics=("parallel",),
            vmem_limit_bytes=vmem_limit),
    )(x_pack, mask_arr, W1_aug, Wd_st, bd, Wc_b, bc, Wo_b, bo)

    out = (out_pack.reshape(G, C, Bt, T)
           .transpose(0, 2, 1, 3)
           .reshape(Bp, C, T))
    return out[:B]


# ---------------------------------------------------------------------------
# Pure-JAX reference mirroring the PyTorch module: unfused taps, pad-left /
# crop-right causal conv, per-layer 1x1 + residual, stacked output heads.
# Matmul operands are cast to bf16 at the same points as the kernel (and b1 is
# rounded to bf16 like the kernel's folded bias column) so the comparison is
# precision-matched while staying structurally independent of the kernel's
# fused / packed formulation.
# ---------------------------------------------------------------------------
def refinement_ref(x, params, *, num_layers):
    W1, b1, Wd, bd, Wc, bc, Wo, bo = params

    def dot(w, a):
        return jnp.dot(w.astype(jnp.bfloat16), a.astype(jnp.bfloat16),
                       preferred_element_type=jnp.float32)

    def shift_right(a, s):
        if s == 0:
            return a
        return jnp.pad(a, ((0, 0), (s, 0)))[:, :a.shape[1]]

    b1_r = b1.astype(jnp.bfloat16).astype(jnp.float32)

    def one(xb):
        h = dot(W1, xb) + b1_r
        for l in range(num_layers):
            d = 2 ** l
            acc = (dot(Wd[3 * l + 0], shift_right(h, 2 * d))
                   + dot(Wd[3 * l + 1], shift_right(h, d))
                   + dot(Wd[3 * l + 2], h)
                   + bd[l])
            y = jnp.maximum(acc, 0.0)
            h = h + (dot(Wc[l], y) + bc[l])
        return dot(Wo, h) + bo

    return jax.vmap(one)(x)


# ---------------------------------------------------------------------------
# Deterministic parameter construction (torch Conv1d layout, tap-major Wd).
# ---------------------------------------------------------------------------
def make_params(key, *, dim, num_f_maps, num_layers, num_classes):
    F = num_f_maps
    C = int(sum(num_classes))
    keys = jax.random.split(key, 8)
    scale = 0.1
    W1 = scale * jax.random.normal(keys[0], (F, dim), jnp.float32)
    b1 = scale * jax.random.normal(keys[1], (F, 1), jnp.float32)
    # Wd[3*l + k] is the (F_out, F_in) slice of layer l's kernel tap k.
    Wd = scale * jax.random.normal(keys[2], (3 * num_layers, F, F), jnp.float32)
    bd = scale * jax.random.normal(keys[3], (num_layers, F, 1), jnp.float32)
    Wc = scale * jax.random.normal(keys[4], (num_layers, F, F), jnp.float32)
    bc = scale * jax.random.normal(keys[5], (num_layers, F, 1), jnp.float32)
    # Stacked output heads == torch.cat((phase, step, LV, RV), axis=1).
    Wo = scale * jax.random.normal(keys[6], (C, F), jnp.float32)
    bo = scale * jax.random.normal(keys[7], (C, 1), jnp.float32)
    return (W1, b1, Wd, bd, Wc, bc, Wo, bo)


if __name__ == "__main__":
    # Small shapes consistent with the module's forward.  B=4 packs Bt=2
    # sequences per grid step (512 lanes per matmul) while still leaving 2
    # "parallel" grid steps for v7x megacore.
    B, dim, T = 4, 16, 256
    num_f_maps = 32
    num_layers = 4
    num_classes = (3, 4, 2, 2)          # phase, step, LV, RV

    key = jax.random.PRNGKey(0)
    kx, kp = jax.random.split(key)
    x = jax.random.normal(kx, (B, dim, T), jnp.float32)      # NCT, like torch
    params = make_params(kp, dim=dim, num_f_maps=num_f_maps,
                         num_layers=num_layers, num_classes=num_classes)

    out = refinement_pallas(x, params, num_layers=num_layers)
    out = jax.block_until_ready(out)

    expected = refinement_ref(x, params, num_layers=num_layers)
    assert out.shape == (B, sum(num_classes), T), out.shape
    # Tolerance covers MXU-vs-XLA f32 accumulation-order differences; the
    # reference uses the same bf16 operand casts so this stays tight.
    np.testing.assert_allclose(np.asarray(out), np.asarray(expected),
                               rtol=1e-3, atol=1e-3)
    print("KERNEL_OK")
</pallas_src>

<mosaic_0001>
module attributes {stable_mosaic.version = 11 : i64} {
  func.func @probe(%arg0: memref<8x128xf32, #tpu.memory_space<vmem>>, %arg1: memref<8x128xf32, #tpu.memory_space<vmem>>) attributes {dimension_semantics = [], scalar_prefetch = 0 : i64, scratch_operands = 0 : i64, tpu.core_type = #tpu.core_type<tc>} {
    %c0 = arith.constant 0 : index
    %c0_0 = arith.constant 0 : index
    %0 = vector.load %arg0[%c0, %c0_0] : memref<8x128xf32, #tpu.memory_space<vmem>>, vector<8x128xf32>
    %c1_i32 = arith.constant 1 : i32
    %1 = tpu.dynamic_rotate %0 by %c1_i32 dim 1 : vector<8x128xf32>, i32 -> vector<8x128xf32>
    %c0_1 = arith.constant 0 : index
    %c0_2 = arith.constant 0 : index
    %2 = vector.load %arg1[%c0_1, %c0_2] : memref<8x128xf32, #tpu.memory_space<vmem>>, vector<8x128xf32>
    tpu.vector_store %arg1[%c0_1, %c0_2], %1 {strides = array<i32>} : memref<8x128xf32, #tpu.memory_space<vmem>>, vector<8x128xf32>,
    return
  }
}

</mosaic_0001>

<bundles_post_ra>
// kernel: tpu_custom_call.1
= control target key start
LH: loop header
LB: loop body
LE: loop exit
PB: predicated region body
PF: predicated region fallthrough
CT: control target
= control target key end

     0   :  { %6 = vsyncpa [#allocation3], 0  ;;  %s128_s0 = inlined_call_operand.hbm [shape: f32[8,128], index: 0, kind: input, shape index: {}]   ;;  %s129_s1 = inlined_call_operand.hbm [shape: f32[8,128], index: 1, kind: output, shape index: {}]  }
   0x1   :  { %7 = vsyncpa [#allocation4], 0  ;;  %s91_s6 = smov [#allocation2]   ;;  %s43_s10 = scalar_lea.hbm %s128_s0, 128 }
   0x2   :  { %s14_s7 = sshll.u32 %s91_s6, 4  ;;  %p44_p0 = scmp.ne.s32.totalorder %s128_s0, %s43_s10  ;;  %s15_s7 = int_to_ptr.vmem [resolvable:$true] %s14_s7 }
   0x3   :  { %p47_p1 = scmp.lt.u32.totalorder %s43_s10, %s128_s0 }
   0x5   :  { %p49_p2 = pnand %p47_p1, %p44_p0 }
   0x7   :  { %52 = shalt.err (!%p49_p2)
}
   0x8   :  { %s53_s15 = scalar_lea.vmem %s15_s7, 128  ;;  %p58_p4 = scmp.lt.s32.totalorder %s15_s7, %s15_s7 }
   0x9   :  { %p54_p3 = scmp.ne.s32.totalorder %s15_s7, %s53_s15  ;;  %p59_p5 = scmp.lt.s32.totalorder %s53_s15, %s53_s15 }
   0xb   :  { %p60_p6 = por %p59_p5, %p58_p4 }
   0xd   :  { %p61_p7 = pnand %p60_p6, %p54_p3 }
   0xf   :  { %64 = shalt.err (!%p61_p7)
}
  0x10   :  { %17 = dma.hbm_to_vmem [thread:$0]  %s128_s0, 128, %s15_s7, [#allocation3]  }
  0x11   :  { %87 = dma.done.wait [#allocation3], 128  }
  0x12   :  { %88 = vsyncadd [#allocation3], 4294967168  ;;  %v21_v0 = vld [vmem:[#allocation2] sm:$0xff]  ;;  %s92_s18 = smov 1   ;;  %s93_s19 = smov [#allocation5]  }
  0x13   :  { %22 = vrot.lane.b32.xlu0 %v21_v0, %s92_s18  ;;  %s31_s20 = sshll.u32 %s93_s19, 4  ;;  %s32_s20 = int_to_ptr.vmem [resolvable:$true] %s31_s20 }
  0x14   :  { %s65_s21 = scalar_lea.vmem %s32_s20, 128  ;;  %p70_p9 = scmp.lt.s32.totalorder %s32_s20, %s32_s20 }
  0x15   :  { %p66_p8 = scmp.ne.s32.totalorder %s32_s20, %s65_s21  ;;  %p71_p10 = scmp.lt.s32.totalorder %s65_s21, %s65_s21 }
  0x17   :  { %p72_p11 = por %p71_p10, %p70_p9 }
  0x19   :  { %p73_p12 = pnand %p72_p11, %p66_p8 }
  0x85   :  { %v23_v1 = vpop.permute.xlu0 %22 }
  0x86   :  { %24 = vst [vmem:[#allocation5] sm:$0xff] %v23_v1 }
  0x87   :  { %76 = shalt.err (!%p73_p12)
}
  0x88   :  { %s77_s0 = scalar_lea.hbm %s129_s1, 128 }
  0x89   :  { %p78_p13 = scmp.ne.s32.totalorder %s129_s1, %s77_s0  ;;  %p81_p0 = scmp.lt.u32.totalorder %s77_s0, %s129_s1 }
  0x8b   :  { %p83_p1 = pnand %p81_p0, %p78_p13 }
  0x8d   :  { %86 = shalt.err (!%p83_p1)
}
  0x8e   :  { %34 = dma.vmem_to_hbm [thread:$0]  %s32_s20, 128, %s129_s1, [#allocation4]  }
  0x8f   :  { %89 = dma.done.wait [#allocation4], 128  }
  0x90   :  { %90 = vsyncadd [#allocation4], 4294967168 }
  0x91   :  { %38 = vsyncpa [#allocation3], 1 }
  0x92   :  { %39 = vsyncpa [#allocation4], 1 }

</bundles_post_ra>
